<compile_context>
chip_gen: v7x
topology: tpu7x:2x2x1
jax: 0.10.0
libtpu: 0.0.40
codegen_flags: <defaults>
</compile_context>

<pallas_src>
import functools

import jax
import jax.numpy as jnp
from jax.experimental import pallas as pl
from jax.experimental.pallas import tpu as pltpu


def _round_up(v, m):
    return ((v + m - 1) // m) * m


def _symm_loss_kernel(x_ref, w1_ref, b1_ref, w2_ref, v_ref, out_ref, *, n_gens, hp):
    """One batch tile: out[b, 0] = sum_i dt_i(b)^2 (unnormalized)."""
    x = x_ref[...]                                                       # (Bt, Dp) bf16
    # Forward hidden pre-activation (MXU, bf16 operands, f32 accumulate).
    pre = jnp.dot(x, w1_ref[...],
                  preferred_element_type=jnp.float32) + b1_ref[...]      # (Bt, Hp) f32
    h = jnp.tanh(pre)                                                    # EUP, f32
    dh = (1.0 - h * h) * w2_ref[...]                                     # (Bt, Hp) f32
    # Generator-folded projection: y[:, i*Hp:(i+1)*Hp] = x @ (blockdiag(gen_i)^T @ W1).
    y = jnp.dot(x, v_ref[...], preferred_element_type=jnp.float32)       # (Bt, n*Hp) f32

    bt = x.shape[0]
    s = jnp.zeros((bt, 1), jnp.float32)
    # n_gens is small & static -> unrolled; for large n_gens switch to
    # lax.fori_loop over lane-aligned dynamic slices to bound live ranges.
    for i in range(n_gens):
        dt = jnp.sum(dh * y[:, i * hp:(i + 1) * hp], axis=-1, keepdims=True)   # (Bt, 1)
        s = s + dt * dt
    out_ref[...] = s


def prepare_symm_params(w1, b1, w2, gens):
    """B-independent preprocessing; call once and reuse across loss evaluations."""
    D, H = w1.shape
    n, d, d2 = gens.shape
    assert d == d2 and D % d == 0, "feature dim must be a multiple of generator size"
    N = D // d
    Dp = _round_up(D, 128)       # lane-dense feature width
    Hp = _round_up(H, 128)       # lane-dense hidden width

    # V[i, Nb*d + j, k] = sum_h gens[i, h, j] * W1[Nb*d + h, k]   (= blockdiag(gen_i)^T @ W1)
    w1r = w1.reshape(N, d, H)
    V = jnp.einsum('nhj,Nhk->nNjk', gens, w1r).reshape(n, D, H)
    Vp = jnp.pad(V, ((0, 0), (0, Dp - D), (0, Hp - H)))
    vcat = jnp.transpose(Vp, (1, 0, 2)).reshape(Dp, n * Hp).astype(jnp.bfloat16)

    w1p = jnp.pad(w1, ((0, Dp - D), (0, Hp - H))).astype(jnp.bfloat16)
    b1p = jnp.pad(b1.reshape(1, H), ((0, 0), (0, Hp - H))).astype(jnp.float32)
    w2p = jnp.pad(w2.reshape(1, H), ((0, 0), (0, Hp - H))).astype(jnp.float32)
    return {'w1': w1p, 'b1': b1p, 'w2': w2p, 'vcat': vcat,
            'n': n, 'D': D, 'Dp': Dp, 'Hp': Hp}


def symm_loss_pallas(x, params, *, block_b=256):
    B, D = x.shape
    n, Dp, Hp = params['n'], params['Dp'], params['Hp']
    assert D == params['D']

    # Batch tiling: sublane-aligned tile; padded rows are exact zeros -> dt = 0.
    Bt = min(block_b, _round_up(B, 8))
    Bp = _round_up(B, Bt)
    num_tiles = Bp // Bt

    xp = jnp.pad(x, ((0, Bp - B), (0, Dp - D))).astype(jnp.bfloat16)

    # Rough per-tile VMEM working set (double-buffered inputs + f32 intermediates).
    ws = 2 * (Bt * Dp * 2 + Dp * Hp * 2 + Dp * n * Hp * 2 + 2 * Hp * 4 + Bt * 4)
    ws += 4 * Bt * Hp * 4 + Bt * n * Hp * 4
    vmem_limit = int(min(max(ws + (8 << 20), 32 << 20), 56 << 20))   # <= v7x 64 MiB physical

    kernel = functools.partial(_symm_loss_kernel, n_gens=n, hp=Hp)
    out = pl.pallas_call(
        kernel,
        out_shape=jax.ShapeDtypeStruct((Bp, 1), jnp.float32),
        grid_spec=pltpu.PrefetchScalarGridSpec(
            num_scalar_prefetch=0,
            grid=(num_tiles,),
            in_specs=[
                pl.BlockSpec((Bt, Dp), lambda i: (i, 0)),        # x tile (streamed)
                pl.BlockSpec((Dp, Hp), lambda i: (0, 0)),        # W1 (resident)
                pl.BlockSpec((1, Hp), lambda i: (0, 0)),         # b1
                pl.BlockSpec((1, Hp), lambda i: (0, 0)),         # w2
                pl.BlockSpec((Dp, n * Hp), lambda i: (0, 0)),    # [V_0 | ... | V_{n-1}]
            ],
            out_specs=pl.BlockSpec((Bt, 1), lambda i: (i, 0)),   # per-row partial sums
        ),
        compiler_params=pltpu.CompilerParams(
            dimension_semantics=("parallel",),   # independent batch tiles (v7x: 2 TCs)
            vmem_limit_bytes=vmem_limit,
        ),
    )(xp, params['w1'], params['b1'], params['w2'], params['vcat'])

    # Tiny final reduction over (Bp, 1) partials; padded rows contribute zero.
    return jnp.sum(out) / (n * B)


# ------------------------- pure-JAX reference -------------------------------
def _model_fwd(x, w1, b1, w2, b2):
    h = jnp.tanh(x @ w1 + b1)
    return h @ w2.T + b2                                      # (B, 1)


def symm_loss_ref(x, w1, b1, w2, b2, gens, N):
    d = gens.shape[-1]
    grads = jax.grad(lambda xx: jnp.sum(_model_fwd(xx, w1, b1, w2, b2)))(x)
    g3 = grads.reshape(x.shape[0], N, d)                      # '... (N d) -> ... N d'
    gg = jnp.einsum('nhd,bNh->nbNd', gens, g3)                # gen_grads
    gg = gg.reshape(gens.shape[0], x.shape[0], N * d)         # 'n ... N d -> n ... (N d)'
    dt = jnp.einsum('nbK,bK->nb', gg, x)                      # differential_trans
    return jnp.mean(dt ** 2)


if __name__ == "__main__":
    key = jax.random.PRNGKey(0)
    B, N, d, H, n_gens = 8, 8, 4, 32, 3
    D = N * d

    ks = jax.random.split(key, 6)
    x = jax.random.normal(ks[0], (B, D), jnp.float32)
    w1 = jax.random.normal(ks[1], (D, H), jnp.float32) * 0.2
    b1 = jax.random.normal(ks[2], (1, H), jnp.float32) * 0.1
    w2 = jax.random.normal(ks[3], (1, H), jnp.float32) * 0.2
    b2 = jax.random.normal(ks[4], (1,), jnp.float32)          # no effect on the loss
    gens = jax.random.normal(ks[5], (n_gens, d, d), jnp.float32)

    params = prepare_symm_params(w1, b1, w2, gens)            # hoisted, B-independent
    loss = symm_loss_pallas(x, params)
    loss = jax.block_until_ready(loss)

    ref = symm_loss_ref(x, w1, b1, w2, b2, gens, N)
    assert jnp.allclose(loss, ref, rtol=5e-2, atol=1e-3), (loss, ref)
    print("KERNEL_OK")
</pallas_src>

<mosaic_0001>
module attributes {stable_mosaic.version = 11 : i64} {
  func.func @_symm_loss_kernel(%arg0: i32, %arg1: memref<8x128xbf16, #tpu.memory_space<vmem>>, %arg2: memref<128x128xbf16, #tpu.memory_space<vmem>>, %arg3: memref<1x128xf32, #tpu.memory_space<vmem>>, %arg4: memref<1x128xf32, #tpu.memory_space<vmem>>, %arg5: memref<128x384xbf16, #tpu.memory_space<vmem>>, %arg6: memref<8x1xf32, #tpu.memory_space<vmem>>) attributes {dimension_semantics = [#tpu.dimension_semantics<parallel>], iteration_bounds = array<i64: 1>, scalar_prefetch = 0 : i64, scratch_operands = 0 : i64, tpu.core_type = #tpu.core_type<tc>, window_params = [{transform_indices = @transform_0, window_bounds = array<i64: 8, 128>}, {pipeline_mode = #tpu.pipeline_mode<synchronous>, transform_indices = @transform_1, window_bounds = array<i64: 128, 128>}, {pipeline_mode = #tpu.pipeline_mode<synchronous>, transform_indices = @transform_2, window_bounds = array<i64: 1, 128>}, {pipeline_mode = #tpu.pipeline_mode<synchronous>, transform_indices = @transform_3, window_bounds = array<i64: 1, 128>}, {pipeline_mode = #tpu.pipeline_mode<synchronous>, transform_indices = @transform_4, window_bounds = array<i64: 128, 384>}, {transform_indices = @transform_5, window_bounds = array<i64: 8, 1>}]} {
    %c0 = arith.constant 0 : index
    %c0_0 = arith.constant 0 : index
    %0 = vector.load %arg1[%c0, %c0_0] : memref<8x128xbf16, #tpu.memory_space<vmem>>, vector<8x128xbf16>
    %c0_1 = arith.constant 0 : index
    %c0_2 = arith.constant 0 : index
    %1 = vector.load %arg2[%c0_1, %c0_2] : memref<128x128xbf16, #tpu.memory_space<vmem>>, vector<128x128xbf16>
    %cst = arith.constant dense<0.000000e+00> : vector<8x128xf32>
    %2 = tpu.matmul %0, %1, %cst {dimension_numbers = #tpu.dot_dimension_numbers<[1], [0], [0], [1], [0, 0, 1, 1], [], []>} : vector<8x128xbf16>, vector<128x128xbf16>, vector<8x128xf32> -> vector<8x128xf32>
    %c0_3 = arith.constant 0 : index
    %c0_4 = arith.constant 0 : index
    %3 = vector.load %arg3[%c0_3, %c0_4] : memref<1x128xf32, #tpu.memory_space<vmem>>, vector<1x128xf32>
    %4 = vector.broadcast %3 : vector<1x128xf32> to vector<8x128xf32>
    %5 = arith.addf %2, %4 : vector<8x128xf32>
    %6 = math.tanh %5 : vector<8x128xf32>
    %7 = arith.mulf %6, %6 : vector<8x128xf32>
    %cst_5 = arith.constant 1.000000e+00 : f32
    %8 = vector.broadcast %cst_5 : f32 to vector<8x128xf32>
    %9 = arith.subf %8, %7 : vector<8x128xf32>
    %c0_6 = arith.constant 0 : index
    %c0_7 = arith.constant 0 : index
    %10 = vector.load %arg4[%c0_6, %c0_7] : memref<1x128xf32, #tpu.memory_space<vmem>>, vector<1x128xf32>
    %11 = vector.broadcast %10 : vector<1x128xf32> to vector<8x128xf32>
    %12 = arith.mulf %9, %11 : vector<8x128xf32>
    %c0_8 = arith.constant 0 : index
    %c0_9 = arith.constant 0 : index
    %13 = vector.load %arg5[%c0_8, %c0_9] : memref<128x384xbf16, #tpu.memory_space<vmem>>, vector<128x384xbf16>
    %cst_10 = arith.constant dense<0.000000e+00> : vector<8x384xf32>
    %14 = tpu.matmul %0, %13, %cst_10 {dimension_numbers = #tpu.dot_dimension_numbers<[1], [0], [0], [1], [0, 0, 1, 1], [], []>} : vector<8x128xbf16>, vector<128x384xbf16>, vector<8x384xf32> -> vector<8x384xf32>
    %cst_11 = arith.constant 0.000000e+00 : f32
    %15 = vector.broadcast %cst_11 : f32 to vector<8x1xf32>
    %16 = vector.extract_strided_slice %14 {offsets = [0, 0], sizes = [8, 128], strides = [1, 1]} : vector<8x384xf32> to vector<8x128xf32>
    %17 = arith.mulf %12, %16 : vector<8x128xf32>
    %cst_12 = arith.constant dense<0.000000e+00> : vector<8xf32>
    %18 = vector.multi_reduction <add>, %17, %cst_12 [1] : vector<8x128xf32> to vector<8xf32>
    %19 = vector.shape_cast %18 : vector<8xf32> to vector<8x1xf32>
    %20 = arith.mulf %19, %19 : vector<8x1xf32>
    %21 = arith.addf %15, %20 : vector<8x1xf32>
    %22 = vector.extract_strided_slice %14 {offsets = [0, 128], sizes = [8, 128], strides = [1, 1]} : vector<8x384xf32> to vector<8x128xf32>
    %23 = arith.mulf %12, %22 : vector<8x128xf32>
    %cst_13 = arith.constant dense<0.000000e+00> : vector<8xf32>
    %24 = vector.multi_reduction <add>, %23, %cst_13 [1] : vector<8x128xf32> to vector<8xf32>
    %25 = vector.shape_cast %24 : vector<8xf32> to vector<8x1xf32>
    %26 = arith.mulf %25, %25 : vector<8x1xf32>
    %27 = arith.addf %21, %26 : vector<8x1xf32>
    %28 = vector.extract_strided_slice %14 {offsets = [0, 256], sizes = [8, 128], strides = [1, 1]} : vector<8x384xf32> to vector<8x128xf32>
    %29 = arith.mulf %12, %28 : vector<8x128xf32>
    %cst_14 = arith.constant dense<0.000000e+00> : vector<8xf32>
    %30 = vector.multi_reduction <add>, %29, %cst_14 [1] : vector<8x128xf32> to vector<8xf32>
    %31 = vector.shape_cast %30 : vector<8xf32> to vector<8x1xf32>
    %32 = arith.mulf %31, %31 : vector<8x1xf32>
    %33 = arith.addf %27, %32 : vector<8x1xf32>
    %c0_15 = arith.constant 0 : index
    %c0_16 = arith.constant 0 : index
    %34 = vector.load %arg6[%c0_15, %c0_16] : memref<8x1xf32, #tpu.memory_space<vmem>>, vector<8x1xf32>
    tpu.vector_store %arg6[%c0_15, %c0_16], %33 {strides = array<i32>} : memref<8x1xf32, #tpu.memory_space<vmem>>, vector<8x1xf32>,
    return
  }
  func.func @transform_0(%arg0: i32) -> (i32, i32) {
    %c0_i32 = arith.constant 0 : i32
    %c0_i32_0 = arith.constant 0 : i32
    return %arg0, %c0_i32 : i32, i32
  }
  func.func @transform_1(%arg0: i32) -> (i32, i32) {
    %c0_i32 = arith.constant 0 : i32
    %c0_i32_0 = arith.constant 0 : i32
    %c0_i32_1 = arith.constant 0 : i32
    return %c0_i32, %c0_i32_0 : i32, i32
  }
  func.func @transform_2(%arg0: i32) -> (i32, i32) {
    %c0_i32 = arith.constant 0 : i32
    %c0_i32_0 = arith.constant 0 : i32
    %c0_i32_1 = arith.constant 0 : i32
    return %c0_i32, %c0_i32_0 : i32, i32
  }
  func.func @transform_3(%arg0: i32) -> (i32, i32) {
    %c0_i32 = arith.constant 0 : i32
    %c0_i32_0 = arith.constant 0 : i32
    %c0_i32_1 = arith.constant 0 : i32
    return %c0_i32, %c0_i32_0 : i32, i32
  }
  func.func @transform_4(%arg0: i32) -> (i32, i32) {
    %c0_i32 = arith.constant 0 : i32
    %c0_i32_0 = arith.constant 0 : i32
    %c0_i32_1 = arith.constant 0 : i32
    return %c0_i32, %c0_i32_0 : i32, i32
  }
  func.func @transform_5(%arg0: i32) -> (i32, i32) {
    %c0_i32 = arith.constant 0 : i32
    %c0_i32_0 = arith.constant 0 : i32
    return %arg0, %c0_i32 : i32, i32
  }
}

</mosaic_0001>

<bundles_post_ra>
// kernel: tpu_custom_call.1
= control target key start
LH: loop header
LB: loop body
LE: loop exit
PB: predicated region body
PF: predicated region fallthrough
CT: control target
= control target key end

     0   :  { %10 = vsyncpa [#allocation3], 0  ;;  %s766_s0 = inlined_call_operand.hbm [shape: bf16[8,128], index: 0, kind: input, shape index: {}]   ;;  %s767_s1 = inlined_call_operand.hbm [shape: bf16[128,128], index: 1, kind: input, shape index: {}]   ;;  %s768_s2 = inlined_call_operand.vmem [shape: f32[1,128], index: 2, kind: input, shape index: {}]   ;;  %s769_s3 = inlined_call_operand.vmem [shape: f32[1,128], index: 3, kind: input, shape index: {}]   ;;  %s770_s4 = inlined_call_operand.hbm [shape: bf16[128,384], index: 4, kind: input, shape index: {}]   ;;  %s771_s5 = inlined_call_operand.vmem [shape: f32[8,1], index: 5, kind: output, shape index: {}]  }
   0x1   :  { %11 = vsyncpa [#allocation5], 0  ;;  %s661_s18 = smov [#allocation4]   ;;  %s591_s22 = scalar_lea.hbm %s767_s1, 1024 }
   0x2   :  { %s27_s19 = sshll.u32 %s661_s18, 4  ;;  %p592_p0 = scmp.ne.s32.totalorder %s767_s1, %s591_s22  ;;  %s28_s19 = int_to_ptr.vmem [resolvable:$true] %s27_s19 }
   0x3   :  { %p595_p1 = scmp.lt.u32.totalorder %s591_s22, %s767_s1 }
   0x5   :  { %p597_p2 = pnand %p595_p1, %p592_p0 }
   0x7   :  { %600 = shalt.err (!%p597_p2)
}
   0x8   :  { %s601_s27 = scalar_lea.vmem %s28_s19, 1024  ;;  %p606_p4 = scmp.lt.s32.totalorder %s28_s19, %s28_s19 }
   0x9   :  { %p602_p3 = scmp.ne.s32.totalorder %s28_s19, %s601_s27  ;;  %p607_p5 = scmp.lt.s32.totalorder %s601_s27, %s601_s27 }
   0xb   :  { %p608_p6 = por %p607_p5, %p606_p4 }
   0xd   :  { %p609_p7 = pnand %p608_p6, %p602_p3 }
   0xf   :  { %612 = shalt.err (!%p609_p7)
}
  0x10   :  { %s662_s28 = smov 64   ;;  %s663_s29 = smov 4  }
  0x11   :  { %33 = dma.hbm_to_vmem [thread:$0]  %s767_s1, 1024, %s28_s19, [#allocation5], %s662_s28, %s662_s28, %s663_s29  }
  0x12   :  { %s664_s7 = smov [#allocation2]   ;;  %s665_s9 = smov [#allocation6]  }
  0x13   :  { %s18_s8 = sshll.u32 %s664_s7, 4  ;;  %s43_s10 = sshll.u32 %s665_s9, 4  ;;  %s19_s8 = int_to_ptr.vmem [resolvable:$true] %s18_s8  ;;  %s44_s10 = int_to_ptr.vmem [resolvable:$true] %s43_s10 }
  0x14   :  { %s613_s13 = scalar_lea.hbm %s766_s0, 64 }
  0x15   :  { %p614_p8 = scmp.ne.s32.totalorder %s766_s0, %s613_s13  ;;  %p617_p9 = scmp.lt.u32.totalorder %s613_s13, %s766_s0 }
  0x17   :  { %p619_p10 = pnand %p617_p9, %p614_p8 }
  0x19   :  { %622 = shalt.err (!%p619_p10)
}
  0x1a   :  { %s623_s1 = scalar_lea.vmem %s19_s8, 64  ;;  %p628_p12 = scmp.lt.s32.totalorder %s19_s8, %s19_s8 }
  0x1b   :  { %p624_p11 = scmp.ne.s32.totalorder %s19_s8, %s623_s1  ;;  %p629_p13 = scmp.lt.s32.totalorder %s623_s1, %s623_s1 }
  0x1d   :  { %p630_p0 = por %p629_p13, %p628_p12 }
  0x1f   :  { %p631_p1 = pnand %p630_p0, %p624_p11 }
  0x21   :  { %634 = shalt.err (!%p631_p1)
}
  0x22   :  { %21 = dma.hbm_to_vmem [thread:$0]  %s766_s0, 64, %s19_s8, [#allocation3]  }
  0x23   :  { %s635_s22 = scalar_lea.hbm %s770_s4, 3072 }
  0x24   :  { %p636_p2 = scmp.ne.s32.totalorder %s770_s4, %s635_s22  ;;  %p639_p3 = scmp.lt.u32.totalorder %s635_s22, %s770_s4 }
  0x26   :  { %p641_p4 = pnand %p639_p3, %p636_p2 }
  0x28   :  { %644 = shalt.err (!%p641_p4)
}
  0x29   :  { %s645_s27 = scalar_lea.vmem %s44_s10, 3072  ;;  %p650_p6 = scmp.lt.s32.totalorder %s44_s10, %s44_s10 }
  0x2a   :  { %p646_p5 = scmp.ne.s32.totalorder %s44_s10, %s645_s27  ;;  %p651_p7 = scmp.lt.s32.totalorder %s645_s27, %s645_s27 }
  0x2c   :  { %p652_p8 = por %p651_p7, %p650_p6 }
  0x2e   :  { %p653_p9 = pnand %p652_p8, %p646_p5 }
  0x30   :  { %656 = shalt.err (!%p653_p9)
}
  0x31   :  { %s666_s0 = smov 192   ;;  %s667_s28 = smov 12  }
  0x32   :  { %49 = dma.hbm_to_vmem [thread:$0]  %s770_s4, 3072, %s44_s10, [#allocation5], %s666_s0, %s666_s0, %s667_s28  }
  0x33   :  { %657 = dma.done.wait [#allocation3], 64  }
  0x34   :  { %658 = vsyncadd [#allocation3], 4294967232 }
  0x35   :  { %659 = dma.done.wait [#allocation5], 4096  }
  0x36   :  { %660 = vsyncadd [#allocation5], 4294963200  ;;  %v668_v0 = vmov 0.0   ;;  %vm669_vm0 = vmmov 0   ;;  %v670_v1 = vmov 0   ;;  %v549_v2 = vld [vmem:[#allocation4] sm:$0xff]  }
  0x37   :  { %499 = vmatprep.subr.bf16.mxu0 %v668_v0  ;;  %515 = vmatprep.mubr.msk.bf16.mxu0 %vm669_vm0, %v668_v0  ;;  %v550_v3 = vld [vmem:[#allocation4 + $0x8] sm:$0xff]   ;;  %v551_v4 = vld [vmem:[#allocation4 + $0x10] sm:$0xff]   ;;  %v560_v8 = vld [vmem:[#allocation6 + $0x18] ss:$12 sps:$4 sm:$0xff]   ;;  %vm439_vm1 = vcmask 7168  }
  0x38   :  { %375 = vmatprep.mubr.bf16.mxu1 %v670_v1  ;;  %500 = vmatpush3.bf16.msra.mxu0 %v549_v2  ;;  %v554_v5 = vld [vmem:[#allocation6 + $0x4] ss:$12 sps:$4 sm:$0xff]   ;;  %v556_v6 = vld [vmem:[#allocation6] ss:$12 sps:$4 sm:$0xff]   ;;  %v558_v7 = vld [vmem:[#allocation6 + $0x1c] ss:$12 sps:$4 sm:$0xff]  }
  0x39   :  { %501 = vmatprep.subr.bf16.mxu0 %v668_v0  ;;  %343 = vmatprep.subr.bf16.mxu1 %v554_v5  ;;  %v552_v9 = vld [vmem:[#allocation4 + $0x18] sm:$0xff]   ;;  %v562_v10 = vld [vmem:[#allocation6 + $0x34] ss:$12 sps:$4 sm:$0xff]   ;;  %v570_v15 = vld [vmem:[#allocation6 + $0x64] ss:$12 sps:$4 sm:$0xff]  }
  0x3a   :  { %344 = vmatpush1.bf16.msra.mxu1 %v556_v6  ;;  %v564_v11 = vld [vmem:[#allocation6 + $0x30] ss:$12 sps:$4 sm:$0xff]   ;;  %v566_v12 = vld [vmem:[#allocation6 + $0x4c] ss:$12 sps:$4 sm:$0xff]   ;;  %v553_v13 = vld [vmem:[#allocation4 + $0x20] sm:$0xff]  }
  0x3b   :  { %345 = vmatprep.subr.bf16.mxu1 %v558_v7  ;;  %v568_v14 = vld [vmem:[#allocation6 + $0x48] ss:$12 sps:$4 sm:$0xff]   ;;  %v572_v17 = vld [vmem:[#allocation6 + $0x60] ss:$12 sps:$4 sm:$0xff]   ;;  %v576_v20 = vld [vmem:[#allocation6 + $0x78] ss:$12 sps:$4 sm:$0xff]  }
  0x3c   :  { %502 = vmatpush3.bf16.msra.mxu0 %v550_v3  ;;  %v557_v16 = vld [vmem:[#allocation4 + $0x28] sm:$0xff]   ;;  %v561_v19 = vld [vmem:[#allocation4 + $0x30] sm:$0xff]   ;;  %v565_v22 = vld [vmem:[#allocation4 + $0x38] sm:$0xff]  }
  0x3d   :  { %503 = vmatprep.subr.bf16.mxu0 %v668_v0  ;;  %v574_v18 = vld [vmem:[#allocation6 + $0x7c] ss:$12 sps:$4 sm:$0xff]   ;;  %v578_v21 = vld [vmem:[#allocation6 + $0x94] ss:$12 sps:$4 sm:$0xff]   ;;  %v582_v24 = vld [vmem:[#allocation6 + $0xac] ss:$12 sps:$4 sm:$0xff]  }
  0x3e   :  { %346 = vmatpush1.bf16.msra.mxu1 %v560_v8  ;;  %v580_v23 = vld [vmem:[#allocation6 + $0x90] ss:$12 sps:$4 sm:$0xff]   ;;  %v569_v26 = vld [vmem:[#allocation6 + $0x8] ss:$12 sps:$4 sm:$0xff]   ;;  %v573_v28 = vld [vmem:[#allocation6 + $0x20] ss:$12 sps:$4 sm:$0xff]  }
  0x3f   :  { %347 = vmatprep.subr.bf16.mxu1 %v562_v10  ;;  %v60_v25 = vld [vmem:[#allocation2] sm:$0xf]  ;;  %v584_v27 = vld [vmem:[#allocation6 + $0xa8] ss:$12 sps:$4 sm:$0xff]   ;;  %v577_v29 = vld [vmem:[#allocation6 + $0x38] ss:$12 sps:$4 sm:$0xff]  }
  0x40   :  { %504 = vmatpush3.bf16.msra.mxu0 %v551_v4  ;;  %v581_v30 = vld [vmem:[#allocation6 + $0x50] ss:$12 sps:$4 sm:$0xff]   ;;  %v585_v31 = vld [vmem:[#allocation6 + $0x68] ss:$12 sps:$4 sm:$0xff]   ;;  %v586_v32 = vld [vmem:[#allocation6 + $0x80] ss:$12 sps:$4 sm:$0xff]  }
  0x41   :  { %505 = vmatprep.subr.bf16.mxu0 %v668_v0  ;;  %v587_v33 = vld [vmem:[#allocation6 + $0x98] ss:$12 sps:$4 sm:$0xff]   ;;  %v588_v34 = vld [vmem:[#allocation6 + $0xb0] ss:$12 sps:$4 sm:$0xff]  }
  0x42   :  { %348 = vmatpush1.bf16.msra.mxu1 %v564_v11  ;;  %v447_v35 = vld [vmem:[%s768_s2] ss:$0 sm:$0xff] }
  0x43   :  { %349 = vmatprep.subr.bf16.mxu1 %v566_v12  ;;  %v456_v47 = vld [vmem:[%s769_s3] ss:$0 sm:$0xff] }
  0x44   :  { %506 = vmatpush3.bf16.msra.mxu0 %v552_v9 }
  0x45   :  { %507 = vmatprep.subr.bf16.mxu0 %v668_v0 }
  0x46   :  { %350 = vmatpush1.bf16.msra.mxu1 %v568_v14 }
  0x47   :  { %351 = vmatprep.subr.bf16.mxu1 %v570_v15 }
  0x48   :  { %508 = vmatpush3.bf16.msra.mxu0 %v553_v13 }
  0x49   :  { %509 = vmatprep.subr.bf16.mxu0 %v668_v0 }
  0x4a   :  { %352 = vmatpush1.bf16.msra.mxu1 %v572_v17 }
  0x4b   :  { %353 = vmatprep.subr.bf16.mxu1 %v574_v18 }
  0x4c   :  { %510 = vmatpush3.bf16.msra.mxu0 %v557_v16 }
  0x4d   :  { %511 = vmatprep.subr.bf16.mxu0 %v668_v0 }
  0x4e   :  { %354 = vmatpush1.bf16.msra.mxu1 %v576_v20 }
  0x4f   :  { %355 = vmatprep.subr.bf16.mxu1 %v578_v21 }
  0x50   :  { %512 = vmatpush3.bf16.msra.mxu0 %v561_v19 }
  0x51   :  { %513 = vmatprep.subr.bf16.mxu0 %v668_v0 }
  0x52   :  { %356 = vmatpush1.bf16.msra.mxu1 %v580_v23 }
  0x53   :  { %357 = vmatprep.subr.bf16.mxu1 %v582_v24 }
  0x54   :  { %514 = vmatpush3.bf16.msra.mxu0 %v565_v22 }
  0x55   :  { %519 = vmatprep.subr.bf16.mxu0 %v668_v0 }
  0x56   :  { %358 = vmatpush1.bf16.msra.mxu1 %v584_v27 }
  0x57   :  { %516 = vmatmul.mubr.bf16.vlgmr.msra.gmra.mrb[0].mxu0 %v60_v25 }
  0x58   :  { %520 = vmatpush3.bf16.msra.mxu0 %v569_v26  ;;  %535 = vmatprep.mubr.msk.bf16.mxu0 %vm669_vm0, %v668_v0 }
  0x59   :  { %521 = vmatprep.subr.bf16.mxu0 %v668_v0  ;;  %376 = vmatmul.mubr.bf16.vlgmr.msra.gmra.mrb[0].mxu1 %v60_v25 }
  0x5c   :  { %522 = vmatpush3.bf16.msra.mxu0 %v573_v28 }
  0x5d   :  { %523 = vmatprep.subr.bf16.mxu0 %v668_v0 }
  0x60   :  { %524 = vmatpush3.bf16.msra.mxu0 %v577_v29 }
  0x61   :  { %525 = vmatprep.subr.bf16.mxu0 %v668_v0 }
  0x64   :  { %526 = vmatpush3.bf16.msra.mxu0 %v581_v30 }
  0x65   :  { %527 = vmatprep.subr.bf16.mxu0 %v668_v0 }
  0x68   :  { %528 = vmatpush3.bf16.msra.mxu0 %v585_v31 }
  0x69   :  { %529 = vmatprep.subr.bf16.mxu0 %v668_v0 }
  0x6c   :  { %530 = vmatpush3.bf16.msra.mxu0 %v586_v32 }
  0x6d   :  { %531 = vmatprep.subr.bf16.mxu0 %v668_v0 }
  0x70   :  { %532 = vmatpush3.bf16.msra.mxu0 %v587_v33 }
  0x71   :  { %533 = vmatprep.subr.bf16.mxu0 %v668_v0 }
  0x74   :  { %534 = vmatpush3.bf16.msra.mxu0 %v588_v34 }
  0x77   :  { %536 = vmatmul.mubr.bf16.vlgmr.msra.gmra.mrb[4].mxu0 %v60_v25 }
 0x12a   :  { %v166_v36 = vpop.f32.mrb[0].mxu0 }
 0x12b   :  { %v167_v37 = vadd.f32 %v447_v35, %v166_v36  ;;  %v517_v38 = vpop.f32.mrb[1].mxu0 }
 0x12c   :  { %v169_v39 = vpop.f32.mrb[2].mxu0  ;;  %v377_v41 = vpop.f32.mrb[0].mxu1 }
 0x12d   :  { %589 = vtanh.f32 %v167_v37  ;;  %v518_v40 = vpop.f32.mrb[3].mxu0  ;;  %v379_v42 = vpop.f32.mrb[1].mxu1 }
 0x12e   :  { %v381_v43 = vpop.f32.mrb[2].mxu1 }
 0x12f   :  { %v382_v44 = vpop.f32.mrb[3].mxu1 }
 0x137   :  { %v590_v45 = vpop.eup %589 }
 0x138   :  { %v173_v46 = vmul.f32 %v590_v45, %v590_v45 }
 0x13a   :  { %v174_v48 = vsub.f32 1.0, %v173_v46 }
 0x13c   :  { %v182_v49 = vmul.f32 %v456_v47, %v174_v48 }
 0x13e   :  { %v429_v50 = vmul.f32 %v379_v42, %v182_v49  ;;  %v424_v51 = vmul.f32 %v377_v41, %v182_v49 }
 0x140   :  { %425 = vadd.xlane.f32.xlu0 %v424_v51 }
 0x144   :  { %430 = vadd.xlane.f32.xlu0 %v429_v50 }
 0x14a   :  { %v418_v52 = vpop.f32.mrb[4].mxu0 }
 0x14b   :  { %v537_v53 = vpop.f32.mrb[5].mxu0  ;;  %v434_v54 = vmul.f32 %v418_v52, %v182_v49 }
 0x14c   :  { %v421_v55 = vpop.f32.mrb[6].mxu0 }
 0x14d   :  { %435 = vadd.xlane.f32.xlu1 %v434_v54  ;;  %v538_v56 = vpop.f32.mrb[7].mxu0 }
 0x1cd   :  { %v426_v57 = vpop.xlane.xlu0 %425 }
 0x1ce   :  { %v427_v60 = vmul.f32 %v426_v57, %v426_v57 }
 0x1d1   :  { %v431_v58 = vpop.xlane.xlu0 %430 }
 0x1d2   :  { %v432_v59 = vmul.f32 %v431_v58, %v431_v58 }
 0x1d4   :  { %v433_v62 = vadd.f32 %v432_v59, %v427_v60 }
 0x1da   :  { %v436_v61 = vpop.xlane.xlu1 %435 }
 0x1db   :  { %v437_v63 = vmul.f32 %v436_v61, %v436_v61 }
 0x1dd   :  { %v438_v0 = vadd.f32 %v437_v63, %v433_v62 }
 0x1df   :  { %440 = vst.msk [vmem:[%s771_s5] sm:$0xff] %vm439_vm1, %v438_v0 }
 0x1e0   :  { %445 = vsyncpa [#allocation3], 1 }
 0x1e1   :  { %446 = vsyncpa [#allocation5], 1 }

</bundles_post_ra>
